<compile_context>
chip_gen: v7x
topology: tpu7x:2x2x1
jax: 0.10.0
libtpu: 0.0.40
codegen_flags: <defaults>
</compile_context>

<pallas_src>
import functools

import jax
import jax.numpy as jnp
from jax import lax
from jax.experimental import pallas as pl
from jax.experimental.pallas import tpu as pltpu


def _round_up(x, m):
    return (x + m - 1) // m * m


def _gather_quant_kernel(ids_ref, alpha_ref, w_hbm, o_ref, buf, sem, *, tm, qn, qp):
    """Gather `tm` weight rows (rows given by prefetched ids), LSQ-quantize, store."""
    i = pl.program_id(0)
    nt = pl.num_programs(0)

    def start_tile(t, slot):
        base = t * tm

        def _start(j, carry):
            row = ids_ref[base + j]
            pltpu.make_async_copy(w_hbm.at[row], buf.at[slot, j], sem.at[slot]).start()
            return carry

        lax.fori_loop(0, tm, _start, 0)

    # Prime the pipeline: tile 0 -> slot 0.
    @pl.when(i == 0)
    def _():
        start_tile(0, 0)

    # Prefetch the next tile's rows into the other slot while this tile is in flight.
    @pl.when(i + 1 < nt)
    def _():
        start_tile(i + 1, (i + 1) % 2)

    # Wait for this tile's row gathers.
    slot = i % 2

    def _wait(j, carry):
        pltpu.make_async_copy(w_hbm.at[0], buf.at[slot, j], sem.at[slot]).wait()
        return carry

    lax.fori_loop(0, tm, _wait, 0)

    # LSQ forward on the gathered rows: round(clamp(w / alpha, Qn, Qp)) * alpha.
    # (grad_scale / round_pass are straight-through estimators; the forward value
    # is just clamp + round.)  f32 throughout — memory-bound, VPU work is free.
    a = alpha_ref[0]
    w_rows = buf[slot]                                    # (tm, D_pad) f32
    q = jnp.round(jnp.clip(w_rows / a, qn, qp)) * a
    o_ref[...] = q.astype(o_ref.dtype)


def embedding_lsq(x_onehot, weight, alpha, padding_idx, nbits, tm=None):
    """Forward pass of EmbeddingLSQ.

    x_onehot: (B, S, V) float32 one-hot rows (the module's input contract)
    weight:   (D, V) float32 (out_features=embedding_dim, in_features=num_embeddings)
    alpha:    () float32 LSQ step size
    """
    B, S, V = x_onehot.shape
    D = weight.shape[0]
    N = B * S

    qn = float(-(2 ** (nbits - 1)))
    qp = float(2 ** (nbits - 1) - 1)

    # Tiling: tm tokens per grid step (multiple of 8); D padded lane-dense to 128.
    D_pad = _round_up(max(D, 128), 128)
    if tm is None:
        tm = min(256, _round_up(N, 8))
    N_pad = _round_up(N, tm)

    # Token ids == torch.topk(x, 1)[1] for one-hot rows.  One XLA reduction pass over
    # x; the (N, V) one-hot is never touched again (no reshape/pad/cast passes).
    ids = jnp.argmax(x_onehot.reshape(N, V), axis=-1).astype(jnp.int32)
    ids = jnp.pad(ids, (0, N_pad - N))          # padded slots gather row 0; sliced off

    # Weight layout prep (one fused XLA pass over D*V): transpose to (V, D_pad) so a
    # gathered row is one contiguous DMA, and zero row `padding_idx` so pad tokens
    # produce exactly 0 (quantize(0) * alpha == 0) — matches the reference mask for
    # one-hot inputs.
    # TODO(synk): like the reference's linear-on-one-hot, this assumes strictly
    # one-hot rows; multi-hot inputs are outside the module's contract.
    wt = jnp.pad(weight.T, ((0, 0), (0, D_pad - D)))                  # (V, D_pad)
    wt = jnp.where(jnp.arange(V, dtype=jnp.int32)[:, None] == padding_idx, 0.0, wt)

    alpha_smem = jnp.asarray(alpha, jnp.float32).reshape(1)
    # TODO(synk): alpha == 0 yields inf/nan, same as the PyTorch module's w / alpha.

    out = pl.pallas_call(
        functools.partial(_gather_quant_kernel, tm=tm, qn=qn, qp=qp),
        out_shape=jax.ShapeDtypeStruct((N_pad, D_pad), jnp.float32),
        grid_spec=pltpu.PrefetchScalarGridSpec(
            num_scalar_prefetch=1,                        # ids -> SMEM
            grid=(N_pad // tm,),
            in_specs=[
                pl.BlockSpec(memory_space=pltpu.SMEM),    # alpha (1,)
                pl.BlockSpec(memory_space=pl.ANY),        # weight rows stay in HBM
            ],
            out_specs=pl.BlockSpec((tm, D_pad), lambda i, ids: (i, 0)),
            scratch_shapes=[
                pltpu.VMEM((2, tm, D_pad), jnp.float32),  # double-buffered gather rows
                pltpu.SemaphoreType.DMA((2,)),            # one DMA semaphore per slot
            ]),
        compiler_params=pltpu.CompilerParams(
            dimension_semantics=("arbitrary",)),
    )(ids, alpha_smem, wt)

    return out[:N, :D].reshape(B, S, D)


def embedding_lsq_ref(x_onehot, weight, alpha, padding_idx, nbits):
    """Pure-JAX reference mirroring the PyTorch semantics."""
    qn = -(2 ** (nbits - 1))
    qp = 2 ** (nbits - 1) - 1
    w_q = jnp.round(jnp.clip(weight / alpha, qn, qp)) * alpha
    out = jnp.einsum("bsv,dv->bsd", x_onehot, w_q)
    idx = jnp.argmax(x_onehot, axis=-1)[..., None]        # topk(x, 1)[1]
    mask = idx == padding_idx
    return jnp.where(mask, 0.0, out)


if __name__ == "__main__":
    # Module config (small, deterministic).
    num_embeddings = 128   # V
    embedding_dim = 32     # D
    padding_idx = 3
    weight_bit = 4
    B, S = 2, 8

    key = jax.random.PRNGKey(0)
    kw, kx = jax.random.split(key)

    # Deterministic parameter init (synthetic; no checkpoint load).
    weight = jax.random.normal(kw, (embedding_dim, num_embeddings), jnp.float32) * 0.1
    qp = 2 ** (weight_bit - 1) - 1
    # alpha initialized as in LinearLSQ's init_state branch: 2*|w|.mean()/sqrt(Qp)
    alpha = 2.0 * jnp.mean(jnp.abs(weight)) / jnp.sqrt(jnp.float32(qp))

    # One-hot inputs, some rows hitting padding_idx.
    idx = jax.random.randint(kx, (B, S), 0, num_embeddings)
    idx = idx.at[0, 0].set(padding_idx).at[1, 3].set(padding_idx)
    x_onehot = jax.nn.one_hot(idx, num_embeddings, dtype=jnp.float32)

    ref = embedding_lsq_ref(x_onehot, weight, alpha, padding_idx, weight_bit)

    # Single-tile path (tm == N).
    out = embedding_lsq(x_onehot, weight, alpha, padding_idx, weight_bit)
    out = jax.block_until_ready(out)
    assert out.shape == (B, S, embedding_dim)
    assert jnp.allclose(out, ref, atol=1e-5, rtol=1e-5)
    assert jnp.all(out[0, 0] == 0.0) and jnp.all(out[1, 3] == 0.0)   # pad rows exact 0

    # Multi-tile path (force tm=8 -> 2 grid steps) to exercise the double-buffered
    # cross-step DMA prefetch.
    out2 = jax.block_until_ready(
        embedding_lsq(x_onehot, weight, alpha, padding_idx, weight_bit, tm=8))
    assert jnp.allclose(out2, ref, atol=1e-5, rtol=1e-5)

    print("KERNEL_OK")
</pallas_src>

<mosaic_0001>
module attributes {stable_mosaic.version = 11 : i64} {
  func.func @_gather_quant_kernel(%arg0: i32, %arg1: memref<16xi32, #tpu.memory_space<smem>>, %arg2: memref<1xf32, #tpu.memory_space<smem>>, %arg3: memref<128x128xf32, #tpu.memory_space<any>>, %arg4: memref<16x128xf32, #tpu.memory_space<vmem>>, %arg5: memref<2x16x128xf32, #tpu.memory_space<vmem>>, %arg6: memref<2x!tpu.dma_semaphore, #tpu.memory_space<semaphore_mem>>) attributes {dimension_semantics = [#tpu.dimension_semantics<arbitrary>], iteration_bounds = array<i64: 1>, scalar_prefetch = 1 : i64, scratch_operands = 2 : i64, tpu.core_type = #tpu.core_type<tc>, window_params = [{transform_indices = @transform_0, window_bounds = array<i64: 1>}, {}, {transform_indices = @transform_2, window_bounds = array<i64: 16, 128>}]} {
    %c0_i32 = arith.constant 0 : i32
    %0 = arith.cmpi eq, %arg0, %c0_i32 : i32
    %1 = arith.extui %0 : i1 to i32
    %c0_i32_0 = arith.constant 0 : i32
    %2 = arith.cmpi ne, %1, %c0_i32_0 : i32
    scf.if %2 {
      %c0_i32_16 = arith.constant 0 : i32
      %c16_i32_17 = arith.constant 16 : i32
      %32 = arith.addi %c0_i32_16, %c16_i32_17 : i32
      %c1_i32_18 = arith.constant 1 : i32
      scf.for %arg7 = %c0_i32_16 to %32 step %c1_i32_18  : i32 {
        %c0_i32_20 = arith.constant 0 : i32
        %33 = arith.addi %c0_i32_20, %arg7 : i32
        %34 = arith.index_cast %33 : i32 to index
        %35 = memref.load %arg1[%34] : memref<16xi32, #tpu.memory_space<smem>>
        %c0_i32_21 = arith.constant 0 : i32
        %c0_i32_22 = arith.constant 0 : i32
        %c0_i32_23 = arith.constant 0 : i32
        %36 = tpu.memref_slice %arg3[%35, %c0_i32_23] : memref<128x128xf32, #tpu.memory_space<any>> -> memref<1x128xf32, #tpu.memory_space<any>>
        %37 = tpu.memref_squeeze %36 : memref<1x128xf32, #tpu.memory_space<any>> -> memref<128xf32, #tpu.memory_space<any>>
        %c0_i32_24 = arith.constant 0 : i32
        %38 = tpu.memref_slice %arg5[%c0_i32_21, %arg7, %c0_i32_24] : memref<2x16x128xf32, #tpu.memory_space<vmem>> -> memref<1x1x128xf32, #tpu.memory_space<vmem>>
        %39 = tpu.memref_squeeze %38 : memref<1x1x128xf32, #tpu.memory_space<vmem>> -> memref<128xf32, #tpu.memory_space<vmem>>
        %40 = tpu.memref_slice %arg6[%c0_i32_22] : memref<2x!tpu.dma_semaphore, #tpu.memory_space<semaphore_mem>> -> memref<1x!tpu.dma_semaphore, #tpu.memory_space<semaphore_mem>>
        %41 = tpu.memref_squeeze %40 : memref<1x!tpu.dma_semaphore, #tpu.memory_space<semaphore_mem>> -> memref<!tpu.dma_semaphore, #tpu.memory_space<semaphore_mem>>
        tpu.enqueue_dma source(%37 : memref<128xf32, #tpu.memory_space<any>>) target(%39 : memref<128xf32, #tpu.memory_space<vmem>>) target_semaphore(%41 : memref<!tpu.dma_semaphore, #tpu.memory_space<semaphore_mem>>)
      }
      %c16_i32_19 = arith.constant 16 : i32
    } else {
    }
    %c1_i32 = arith.constant 1 : i32
    %3 = arith.addi %arg0, %c1_i32 : i32
    %c1_i32_1 = arith.constant 1 : i32
    %4 = arith.cmpi slt, %3, %c1_i32_1 : i32
    %5 = arith.extui %4 : i1 to i32
    %c0_i32_2 = arith.constant 0 : i32
    %6 = arith.cmpi ne, %5, %c0_i32_2 : i32
    scf.if %6 {
      %c1_i32_16 = arith.constant 1 : i32
      %32 = arith.addi %arg0, %c1_i32_16 : i32
      %c1_i32_17 = arith.constant 1 : i32
      %33 = arith.addi %arg0, %c1_i32_17 : i32
      %c2_i32_18 = arith.constant 2 : i32
      %c0_i32_19 = arith.constant 0 : i32
      %34 = arith.cmpi eq, %c2_i32_18, %c0_i32_19 : i32
      %c1_i32_20 = arith.constant 1 : i32
      %35 = arith.select %34, %c1_i32_20, %c2_i32_18 : i32
      %36 = arith.remsi %33, %35 : i32
      %c0_i32_21 = arith.constant 0 : i32
      %37 = arith.cmpi ne, %36, %c0_i32_21 : i32
      %c0_i32_22 = arith.constant 0 : i32
      %38 = arith.cmpi slt, %36, %c0_i32_22 : i32
      %c0_i32_23 = arith.constant 0 : i32
      %39 = arith.cmpi slt, %35, %c0_i32_23 : i32
      %40 = arith.xori %38, %39 : i1
      %41 = arith.andi %40, %37 : i1
      %42 = arith.addi %36, %35 : i32
      %43 = arith.select %41, %42, %36 : i32
      %c16_i32_24 = arith.constant 16 : i32
      %44 = arith.muli %32, %c16_i32_24 : i32
      %c0_i32_25 = arith.constant 0 : i32
      %c16_i32_26 = arith.constant 16 : i32
      %45 = arith.addi %c0_i32_25, %c16_i32_26 : i32
      %c1_i32_27 = arith.constant 1 : i32
      scf.for %arg7 = %c0_i32_25 to %45 step %c1_i32_27  : i32 {
        %46 = arith.addi %44, %arg7 : i32
        %47 = arith.index_cast %46 : i32 to index
        %48 = memref.load %arg1[%47] : memref<16xi32, #tpu.memory_space<smem>>
        %c0_i32_29 = arith.constant 0 : i32
        %49 = tpu.memref_slice %arg3[%48, %c0_i32_29] : memref<128x128xf32, #tpu.memory_space<any>> -> memref<1x128xf32, #tpu.memory_space<any>>
        %50 = tpu.memref_squeeze %49 : memref<1x128xf32, #tpu.memory_space<any>> -> memref<128xf32, #tpu.memory_space<any>>
        %c0_i32_30 = arith.constant 0 : i32
        %51 = tpu.memref_slice %arg5[%43, %arg7, %c0_i32_30] : memref<2x16x128xf32, #tpu.memory_space<vmem>> -> memref<1x1x128xf32, #tpu.memory_space<vmem>>
        %52 = tpu.memref_squeeze %51 : memref<1x1x128xf32, #tpu.memory_space<vmem>> -> memref<128xf32, #tpu.memory_space<vmem>>
        %53 = tpu.memref_slice %arg6[%43] : memref<2x!tpu.dma_semaphore, #tpu.memory_space<semaphore_mem>> -> memref<1x!tpu.dma_semaphore, #tpu.memory_space<semaphore_mem>>
        %54 = tpu.memref_squeeze %53 : memref<1x!tpu.dma_semaphore, #tpu.memory_space<semaphore_mem>> -> memref<!tpu.dma_semaphore, #tpu.memory_space<semaphore_mem>>
        tpu.enqueue_dma source(%50 : memref<128xf32, #tpu.memory_space<any>>) target(%52 : memref<128xf32, #tpu.memory_space<vmem>>) target_semaphore(%54 : memref<!tpu.dma_semaphore, #tpu.memory_space<semaphore_mem>>)
      }
      %c16_i32_28 = arith.constant 16 : i32
    } else {
    }
    %c2_i32 = arith.constant 2 : i32
    %c0_i32_3 = arith.constant 0 : i32
    %7 = arith.cmpi eq, %c2_i32, %c0_i32_3 : i32
    %c1_i32_4 = arith.constant 1 : i32
    %8 = arith.select %7, %c1_i32_4, %c2_i32 : i32
    %9 = arith.remsi %arg0, %8 : i32
    %c0_i32_5 = arith.constant 0 : i32
    %10 = arith.cmpi ne, %9, %c0_i32_5 : i32
    %c0_i32_6 = arith.constant 0 : i32
    %11 = arith.cmpi slt, %9, %c0_i32_6 : i32
    %c0_i32_7 = arith.constant 0 : i32
    %12 = arith.cmpi slt, %8, %c0_i32_7 : i32
    %13 = arith.xori %11, %12 : i1
    %14 = arith.andi %13, %10 : i1
    %15 = arith.addi %9, %8 : i32
    %16 = arith.select %14, %15, %9 : i32
    %c0_i32_8 = arith.constant 0 : i32
    %c16_i32 = arith.constant 16 : i32
    %17 = arith.addi %c0_i32_8, %c16_i32 : i32
    %c1_i32_9 = arith.constant 1 : i32
    scf.for %arg7 = %c0_i32_8 to %17 step %c1_i32_9  : i32 {
      %c0_i32_16 = arith.constant 0 : i32
      %c0_i32_17 = arith.constant 0 : i32
      %32 = tpu.memref_slice %arg3[%c0_i32_16, %c0_i32_17] : memref<128x128xf32, #tpu.memory_space<any>> -> memref<1x128xf32, #tpu.memory_space<any>>
      %33 = tpu.memref_squeeze %32 : memref<1x128xf32, #tpu.memory_space<any>> -> memref<128xf32, #tpu.memory_space<any>>
      %c0_i32_18 = arith.constant 0 : i32
      %34 = tpu.memref_slice %arg5[%16, %arg7, %c0_i32_18] : memref<2x16x128xf32, #tpu.memory_space<vmem>> -> memref<1x1x128xf32, #tpu.memory_space<vmem>>
      %35 = tpu.memref_squeeze %34 : memref<1x1x128xf32, #tpu.memory_space<vmem>> -> memref<128xf32, #tpu.memory_space<vmem>>
      %36 = tpu.memref_slice %arg6[%16] : memref<2x!tpu.dma_semaphore, #tpu.memory_space<semaphore_mem>> -> memref<1x!tpu.dma_semaphore, #tpu.memory_space<semaphore_mem>>
      %37 = tpu.memref_squeeze %36 : memref<1x!tpu.dma_semaphore, #tpu.memory_space<semaphore_mem>> -> memref<!tpu.dma_semaphore, #tpu.memory_space<semaphore_mem>>
      tpu.wait_dma2 semaphore(%37 : memref<!tpu.dma_semaphore, #tpu.memory_space<semaphore_mem>>) src(%33 : memref<128xf32, #tpu.memory_space<any>>) dst(%35 : memref<128xf32, #tpu.memory_space<vmem>>)
    }
    %c16_i32_10 = arith.constant 16 : i32
    %c0 = arith.constant 0 : index
    %18 = memref.load %arg2[%c0] : memref<1xf32, #tpu.memory_space<smem>>
    %19 = arith.index_cast %16 : i32 to index
    %c0_11 = arith.constant 0 : index
    %c0_12 = arith.constant 0 : index
    %20 = vector.load %arg5[%19, %c0_11, %c0_12] : memref<2x16x128xf32, #tpu.memory_space<vmem>>, vector<1x16x128xf32>
    %21 = vector.shape_cast %20 : vector<1x16x128xf32> to vector<16x128xf32>
    %22 = vector.broadcast %18 : f32 to vector<16x128xf32>
    %23 = arith.divf %21, %22 : vector<16x128xf32>
    %cst = arith.constant -8.000000e+00 : f32
    %cst_13 = arith.constant 7.000000e+00 : f32
    %24 = vector.broadcast %cst : f32 to vector<16x128xf32>
    %25 = arith.maximumf %24, %23 : vector<16x128xf32>
    %26 = vector.broadcast %cst_13 : f32 to vector<16x128xf32>
    %27 = arith.minimumf %26, %25 : vector<16x128xf32>
    %28 = math.roundeven %27 : vector<16x128xf32>
    %29 = vector.broadcast %18 : f32 to vector<16x128xf32>
    %30 = arith.mulf %28, %29 : vector<16x128xf32>
    %c0_14 = arith.constant 0 : index
    %c0_15 = arith.constant 0 : index
    %31 = vector.load %arg4[%c0_14, %c0_15] : memref<16x128xf32, #tpu.memory_space<vmem>>, vector<16x128xf32>
    tpu.vector_store %arg4[%c0_14, %c0_15], %30 {strides = array<i32>} : memref<16x128xf32, #tpu.memory_space<vmem>>, vector<16x128xf32>,
    return
  }
  func.func @transform_0(%arg0: i32, %arg1: memref<16xi32, #tpu.memory_space<smem>>) -> i32 {
    %c0_i32 = arith.constant 0 : i32
    %c0_i32_0 = arith.constant 0 : i32
    return %c0_i32 : i32
  }
  func.func @transform_2(%arg0: i32, %arg1: memref<16xi32, #tpu.memory_space<smem>>) -> (i32, i32) {
    %c0_i32 = arith.constant 0 : i32
    %c0_i32_0 = arith.constant 0 : i32
    return %arg0, %c0_i32 : i32, i32
  }
}

</mosaic_0001>

<bundles_post_ra>
// kernel: tpu_custom_call.1
= control target key start
LH: loop header
LB: loop body
LE: loop exit
PB: predicated region body
PF: predicated region fallthrough
CT: control target
= control target key end

     0   :  { %s351_s0 = inlined_call_operand.vmem [shape: s32[16], index: 0, kind: input, shape index: {}]   ;;  %s352_s1 = inlined_call_operand.<no memory space> [shape: f32[1], index: 1, kind: input, shape index: {}]   ;;  %s353_s2 = inlined_call_operand.hbm [shape: f32[128,128], index: 2, kind: input, shape index: {}]   ;;  %s354_s3 = inlined_call_operand.hbm [shape: f32[16,128], index: 3, kind: output, shape index: {}]  }
   0x1   :  { %s8_s14 = sshll.u32 %s351_s0, 4  ;;  %12 = sst [smem:[#allocation6]] %s352_s1  ;;  %s9_s14 = int_to_ptr.vmem [resolvable:$true] %s8_s14 }
   0x2   :  { %s209_s17 = scalar_lea.vmem %s9_s14, 16  ;;  %p214_p1 = scmp.lt.s32.totalorder %s9_s14, %s9_s14 }
   0x3   :  { %p210_p0 = scmp.ne.s32.totalorder %s9_s14, %s209_s17  ;;  %p215_p2 = scmp.lt.s32.totalorder %s209_s17, %s209_s17 }
   0x5   :  { %p216_p3 = por %p215_p2, %p214_p1 }
   0x7   :  { %p217_p4 = pnand %p216_p3, %p210_p0 }
   0x9   :  { %220 = shalt.err (!%p217_p4)  }
   0xa   :  { %s289_s18 = smov [#allocation5]  }
   0xb   :  { %11 = dma.vmem_to_smem %s9_s14, 16, %s289_s18, [#allocation4] }
   0xc   :  { %275 = dma.done.wait [#allocation4], 16 }
   0xd   :  { %276 = vsyncadd [#allocation4], 4294967280 }
   0xe   :  { %14 = sfence }
   0xf   :  { %15 = vsyncpa [#allocation8], 0  ;;  %s320_s19 = smov 0  }
  0x10 LB: > { %s28_s0 = sld [smem:[#allocation5 + %s283_s19]]  ;;  %s31_s1 = scalar_lea.vmem [#allocation2], %s283_s19  ;;  %s283_s19 = sphi %s320_s19, %s27_s19  }
  0x11   : > { %s39_s20 = sshll.u32 %s31_s1, 4  ;;  %s223_s28 = scalar_lea.hbm %s353_s2, 2048  ;;  %s40_s20 = int_to_ptr.vmem [resolvable:$true] %s39_s20 }
  0x16   : > { %s178_s21 = sshll.u32 %s28_s0, 4 }
  0x17   : > { %s30_s24 = scalar_lea.hbm %s353_s2, %s178_s21 }
  0x18   : > { %s221_s25 = scalar_lea.hbm %s30_s24, 16  ;;  %p224_p6 = scmp.lt.u32.totalorder %s30_s24, %s353_s2 }
  0x19   : > { %p222_p5 = scmp.ne.s32.totalorder %s30_s24, %s221_s25  ;;  %p225_p7 = scmp.lt.u32.totalorder %s223_s28, %s221_s25 }
  0x1a   : > { %p227_p9 = scmp.lt.u32.totalorder %s221_s25, %s30_s24 }
  0x1b   : > { %p226_p8 = por %p225_p7, %p224_p6 }
  0x1d   : > { %p228_p10 = por %p227_p9, %p226_p8 }
  0x1f   : > { %p229_p11 = pnand %p228_p10, %p222_p5 }
  0x21   : > { %232 = shalt.err (!%p229_p11)  }
  0x22   : > { %s233_s4 = scalar_lea.vmem %s40_s20, 16  ;;  %s290_s5 = smov [#allocation2]  }
  0x23   : > { %p234_p12 = scmp.ne.s32.totalorder %s40_s20, %s233_s4  ;;  %s235_s6 = sshll.u32 %s290_s5, 4  ;;  %s236_s6 = int_to_ptr.vmem [resolvable:$false] %s235_s6 }
  0x24   : > { %s237_s7 = scalar_lea.vmem %s236_s6, 512  ;;  %p238_p13 = scmp.lt.s32.totalorder %s40_s20, %s236_s6 }
  0x25   : > { %p239_p0 = scmp.lt.s32.totalorder %s237_s7, %s233_s4 }
  0x27   : > { %p240_p1 = por %p239_p0, %p238_p13 }
  0x29   : > { %p241_p2 = pnand %p240_p1, %p234_p12 }
  0x2b   : > { %244 = shalt.err (!%p241_p2)  }
  0x2c   : > { %42 = dma.hbm_to_vmem [thread:$0]  %s30_s24, 16, %s40_s20, [#allocation3] }
  0x2d   : > { %s27_s19 = sadd.s32 1, %s283_s19  }
  0x2e   : > { %p24_p3 = scmp.ge.s32.totalorder %s27_s19, 16  }
  0x2f   :  { %s285_s8 = smov (%p24_p3), 0  }
  0x30   :  { %26 = sbr.rel (!%p24_p3) target bundleno = 16 (0x10), region = 69 }
  0x37 LB: > { %277 = dma.done.wait [#allocation3], 16  ;;  %s287_s8 = sphi %s285_s8, %s99_s8  }
  0x38   : > { %278 = vsyncadd [#allocation3], 4294967280  ;;  %s99_s8 = sadd.s32 1, %s287_s8  }
  0x39   : > { %p96_p4 = scmp.ge.s32.totalorder %s99_s8, 16  }
  0x3a   :  { %s103_s9 = sld [smem:[#allocation6]] (%p96_p4)  ;;  %v106_v1 = vld [vmem:[#allocation2] sm:$0xff] (%p96_p4)  ;;  %v107_v2 = vld [vmem:[#allocation2 + $0x8] sm:$0xff] (%p96_p4)  ;;  %s291_s2 = smov (%p96_p4), [#allocation7]  }
  0x3b   :  { %98 = sbr.rel (!%p96_p4) target bundleno = 55 (0x37), region = 91  ;;  %s127_s10 = sshll.u32 (%p96_p4), %s291_s2, 4  ;;  %s128_s10 = int_to_ptr.vmem [resolvable:$true] %s127_s10 }
  0x3c   :  { %s245_s11 = scalar_lea.vmem (%p96_p4), %s128_s10, 256  ;;  %p250_p6 = scmp.lt.s32.totalorder (%p96_p4), %s128_s10, %s128_s10 }
  0x3d   :  { %p246_p5 = scmp.ne.s32.totalorder (%p96_p4), %s128_s10, %s245_s11  ;;  %p251_p7 = scmp.lt.s32.totalorder (%p96_p4), %s245_s11, %s245_s11 }
  0x3f   :  { %p252_p8 = por (%p96_p4), %p251_p7, %p250_p6 }
  0x40   :  { %v108_v0 = vstv (%p96_p4), %s103_s9 }
  0x41   :  { %207 = vrcp.f32 (%p96_p4), %v108_v0  ;;  %p253_p9 = pnand (%p96_p4), %p252_p8, %p246_p5 }
  0x4b   :  { %v208_v3 = vpop.eup %207 }
  0x4c   :  { %v110_v4 = vmul.f32 %v208_v3, %v106_v1  ;;  %v111_v5 = vmul.f32 %v208_v3, %v107_v2 }
  0x4e   :  { %v112_v6 = vmax.f32 %v110_v4, -8.0  ;;  %v113_v7 = vmax.f32 %v111_v5, -8.0 }
  0x50   :  { %v114_v8 = vmin.f32 %v112_v6, 7.0  ;;  %v115_v9 = vmin.f32 %v113_v7, 7.0 }
  0x52   :  { %v185_v10 = vround.rtne.f32 %v114_v8  ;;  %v186_v11 = vround.rtne.f32 %v115_v9 }
  0x54   :  { %v118_v12 = vmul.f32 %v185_v10, %v108_v0  ;;  %v119_v13 = vmul.f32 %v186_v11, %v108_v0 }
  0x56   :  { %120 = vst [vmem:[#allocation7] sm:$0xff] %v118_v12  ;;  %121 = vst [vmem:[#allocation7 + $0x8] sm:$0xff] %v119_v13 }
  0x57   :  { %256 = shalt.err (!%p253_p9)
}
  0x58   :  { %s257_s14 = scalar_lea.hbm %s354_s3, 256 }
  0x59   :  { %p258_p10 = scmp.ne.s32.totalorder %s354_s3, %s257_s14  ;;  %p261_p11 = scmp.lt.u32.totalorder %s257_s14, %s354_s3 }
  0x5b   :  { %p263_p12 = pnand %p261_p11, %p258_p10 }
  0x5d   :  { %266 = shalt.err (!%p263_p12)
}
  0x5e   :  { %s292_s19 = smov 128   ;;  %s293_s0 = smov 8  }
  0x5f   :  { %133 = dma.vmem_to_hbm [thread:$0]  %s128_s10, 256, %s354_s3, [#allocation8], %s292_s19, %s292_s19, %s293_s0  }
  0x60   :  { %279 = dma.done.wait [#allocation8], 256  }
  0x61   :  { %280 = vsyncadd [#allocation8], 4294967040 }
  0x62   :  { %137 = vsyncpa [#allocation8], 1 }
  0x63   :  { %138 = vsyncmov [#allocation3] }
  0x66   :  { %s139_s21 = vpop.sfrf %138 }
  0x67   :  { %p181_p13 = scmp.ne.s32.totalorder %s139_s21, 0 }
  0x69   :  { %143 = shalt.err (%p181_p13)  }
  0x6a   :  { %145 = vsyncmov [#allocation3 + $0x1] }
  0x6d   :  { %s146_s22 = vpop.sfrf %145 }
  0x6e   :  { %p182_p0 = scmp.ne.s32.totalorder %s146_s22, 0 }
  0x70   :  { %150 = shalt.err (%p182_p0)  }

</bundles_post_ra>
